<compile_context>
chip_gen: v5e
topology: v5e:2x2
jax: 0.10.0
libtpu: 0.0.40
codegen_flags: <defaults>
</compile_context>

<pallas_src>
import functools

import jax
import jax.numpy as jnp
from jax.experimental import pallas as pl
from jax.experimental.pallas import tpu as pltpu


def _cdiv(a, b):
    return -(-a // b)


def _round_up(x, m):
    return _cdiv(x, m) * m


def _leaky_relu(v):
    return jnp.where(v >= 0, v, 0.2 * v)


def _relu(v):
    return jnp.maximum(v, 0)


# ----------------------------------------------------------------------------
# Fused, tiled MXU matmul: out = act_out(act_in(A) @ B + bias)
# Supports an optional leading "phase" batch axis (used by ConvTranspose2d).
# ----------------------------------------------------------------------------
def fused_matmul(a, b, bias=None, act_in=None, act_out=None,
                 out_dtype=jnp.bfloat16):
    """a: (M,K) or (P,M,K); b: (K,N) or (P,K,N); bias: (N,) or None.

    act_in must satisfy act_in(0) == 0 (applied to zero-padded A tiles inside
    the kernel).  bf16 inputs, f32 accumulation, bf16/f32 output.
    """
    squeeze = a.ndim == 2
    if squeeze:
        a, b = a[None], b[None]
    P, M, K = a.shape
    Pb, Kb, N = b.shape
    assert P == Pb and K == Kb
    has_bias = bias is not None

    # Tile selection: single K tile whenever K <= 2048, lane-dense N,
    # sublane-friendly M (multiple of 16 for bf16 packing).
    gm = _cdiv(M, 512)
    tm = _round_up(_cdiv(M, gm), 16)
    gn = _cdiv(N, 256)
    tn = _round_up(_cdiv(N, gn), 128)
    gk = _cdiv(K, 2048)
    tk = _round_up(_cdiv(K, gk), 128)
    if P * gm * gn == 1 and tm >= 32:
        # v7x: ensure >=2 parallel grid tiles so both TensorCores get work.
        gm, tm = 2, _round_up(_cdiv(M, 2), 16)
    Mp, Np, Kp = gm * tm, gn * tn, gk * tk

    a_p = jnp.pad(a, ((0, 0), (0, Mp - M), (0, Kp - K))).astype(jnp.bfloat16)
    b_p = jnp.pad(b, ((0, 0), (0, Kp - K), (0, Np - N))).astype(jnp.bfloat16)
    args = [a_p, b_p]
    if has_bias:
        args.append(jnp.pad(bias.astype(jnp.float32).reshape(1, N),
                            ((0, 0), (0, Np - N))))

    if gk == 1:
        # Whole reduction in one tile: MXU result goes straight to the output
        # block (no scratch accumulator, no K-phase pl.when).
        def kernel(*refs):
            if has_bias:
                a_ref, b_ref, bias_ref, o_ref = refs
            else:
                a_ref, b_ref, o_ref = refs
                bias_ref = None
            a_t = a_ref[...]
            if act_in is not None:
                a_t = act_in(a_t)
            r = jnp.dot(a_t, b_ref[...], preferred_element_type=jnp.float32)
            if has_bias:
                r = r + bias_ref[...]
            if act_out is not None:
                r = act_out(r)
            o_ref[...] = r.astype(o_ref.dtype)

        grid = (P, gm, gn)
        in_specs = [pl.BlockSpec((None, tm, tk), lambda p, i, j: (p, i, 0)),
                    pl.BlockSpec((None, tk, tn), lambda p, i, j: (p, 0, j))]
        if has_bias:
            in_specs.append(pl.BlockSpec((1, tn), lambda p, i, j: (0, j)))
        out_spec = pl.BlockSpec((None, tm, tn), lambda p, i, j: (p, i, j))
        scratch = []
        dims = ("parallel", "parallel", "parallel")
    else:
        def kernel(*refs):
            if has_bias:
                a_ref, b_ref, bias_ref, o_ref, acc_ref = refs
            else:
                a_ref, b_ref, o_ref, acc_ref = refs
                bias_ref = None

            @pl.when(pl.program_id(3) == 0)
            def _init():
                acc_ref[...] = jnp.zeros_like(acc_ref)

            a_t = a_ref[...]
            if act_in is not None:
                a_t = act_in(a_t)
            acc_ref[...] += jnp.dot(a_t, b_ref[...],
                                    preferred_element_type=jnp.float32)

            @pl.when(pl.program_id(3) == pl.num_programs(3) - 1)
            def _fin():
                r = acc_ref[...]
                if has_bias:
                    r = r + bias_ref[...]
                if act_out is not None:
                    r = act_out(r)
                o_ref[...] = r.astype(o_ref.dtype)

        grid = (P, gm, gn, gk)
        in_specs = [pl.BlockSpec((None, tm, tk), lambda p, i, j, k: (p, i, k)),
                    pl.BlockSpec((None, tk, tn), lambda p, i, j, k: (p, k, j))]
        if has_bias:
            in_specs.append(pl.BlockSpec((1, tn), lambda p, i, j, k: (0, j)))
        out_spec = pl.BlockSpec((None, tm, tn), lambda p, i, j, k: (p, i, j))
        scratch = [pltpu.VMEM((tm, tn), jnp.float32)]
        dims = ("parallel", "parallel", "parallel", "arbitrary")

    out = pl.pallas_call(
        kernel,
        out_shape=jax.ShapeDtypeStruct((P, Mp, Np), out_dtype),
        grid_spec=pltpu.PrefetchScalarGridSpec(
            num_scalar_prefetch=0, grid=grid,
            in_specs=in_specs, out_specs=out_spec, scratch_shapes=scratch),
        compiler_params=pltpu.CompilerParams(
            dimension_semantics=dims,
            vmem_limit_bytes=32 * 1024 * 1024),
    )(*args)
    out = out[:, :M, :N]
    return out[0] if squeeze else out


# ----------------------------------------------------------------------------
# BatchNorm2d (train-mode batch statistics, biased variance) on NHWC.
# Layout (L, C): channels on the 128 lanes; L tiled + grid-accumulated stats.
# ----------------------------------------------------------------------------
def batchnorm2d_nhwc(x, gamma, beta, eps=1e-5):
    N, H, W, C = x.shape
    L = N * H * W
    Cp = _round_up(C, 128)
    tl = min(1024, _round_up(L, 8))
    gl = _cdiv(L, tl)
    Lp = gl * tl

    x2 = jnp.pad(x.reshape(L, C),
                 ((0, Lp - L), (0, Cp - C))).astype(jnp.bfloat16)

    # Pass 1: grid-accumulated per-channel sum / sum-of-squares (padded rows
    # are zeros, so they contribute nothing).
    def stats_kernel(x_ref, s_ref, q_ref):
        @pl.when(pl.program_id(0) == 0)
        def _init():
            s_ref[...] = jnp.zeros_like(s_ref)
            q_ref[...] = jnp.zeros_like(q_ref)

        xx = x_ref[...].astype(jnp.float32)
        s_ref[...] += jnp.sum(xx, axis=0, keepdims=True)
        q_ref[...] += jnp.sum(xx * xx, axis=0, keepdims=True)

    s, q = pl.pallas_call(
        stats_kernel,
        out_shape=(jax.ShapeDtypeStruct((1, Cp), jnp.float32),
                   jax.ShapeDtypeStruct((1, Cp), jnp.float32)),
        grid=(gl,),
        in_specs=[pl.BlockSpec((tl, Cp), lambda i: (i, 0))],
        out_specs=(pl.BlockSpec((1, Cp), lambda i: (0, 0)),
                   pl.BlockSpec((1, Cp), lambda i: (0, 0))),
        compiler_params=pltpu.CompilerParams(
            dimension_semantics=("arbitrary",)),
    )(x2)

    mean = s / L
    var = q / L - mean * mean
    g = jnp.pad(gamma.astype(jnp.float32), (0, Cp - C)).reshape(1, Cp)
    bt = jnp.pad(beta.astype(jnp.float32), (0, Cp - C)).reshape(1, Cp)
    scale = g * jax.lax.rsqrt(var + eps)
    shift = bt - mean * scale

    # Pass 2: normalize + affine, lane-dense, bf16 output.
    def norm_kernel(x_ref, sc_ref, sh_ref, o_ref):
        o_ref[...] = (x_ref[...].astype(jnp.float32) * sc_ref[...]
                      + sh_ref[...]).astype(o_ref.dtype)

    y = pl.pallas_call(
        norm_kernel,
        out_shape=jax.ShapeDtypeStruct((Lp, Cp), jnp.bfloat16),
        grid=(gl,),
        in_specs=[pl.BlockSpec((tl, Cp), lambda i: (i, 0)),
                  pl.BlockSpec((1, Cp), lambda i: (0, 0)),
                  pl.BlockSpec((1, Cp), lambda i: (0, 0))],
        out_specs=pl.BlockSpec((tl, Cp), lambda i: (i, 0)),
        compiler_params=pltpu.CompilerParams(
            dimension_semantics=("parallel",)),
    )(x2, scale, shift)
    return y[:L, :C].reshape(N, H, W, C)


# ----------------------------------------------------------------------------
# Conv2d (k=4, s=2, p=1, bias=False) on NHWC via im2col + fused matmul
# ----------------------------------------------------------------------------
def conv2d_nhwc(x, w, act_in=None):
    """x: (N,H,W,Cin); w: torch layout (Cout,Cin,4,4).  act_in fused in-kernel
    (valid because act_in(0)==0 matches the conv's zero spatial padding)."""
    Cout, Cin, k, _ = w.shape
    N, H, W, _ = x.shape
    Ho, Wo = H // 2, W // 2
    xp = jnp.pad(x, ((0, 0), (1, 1), (1, 1), (0, 0)))
    taps = []
    for kh in range(k):
        for kw in range(k):
            taps.append(xp[:, kh:kh + 2 * Ho:2, kw:kw + 2 * Wo:2, :])
    cols = jnp.stack(taps, axis=3).reshape(N * Ho * Wo, k * k * Cin)
    wmat = jnp.transpose(w, (2, 3, 1, 0)).reshape(k * k * Cin, Cout)
    out = fused_matmul(cols, wmat, act_in=act_in)        # (M, Cout) bf16
    return out.reshape(N, Ho, Wo, Cout)


# ----------------------------------------------------------------------------
# ConvTranspose2d (k=4, s=2, p=1) on NHWC via 4-phase sub-pixel decomposition.
# All 4 phases run in ONE pallas_call (leading "parallel" phase grid axis).
#   y[2i+a, 2j+b] uses input offsets/kernel rows per _PHASE_TAPS below:
#   a=0: (ih=i-1, kh=3), (ih=i, kh=1);  a=1: (ih=i, kh=2), (ih=i+1, kh=0).
# ----------------------------------------------------------------------------
_PHASE_TAPS = {0: ((-1, 3), (0, 1)), 1: ((0, 2), (1, 0))}


def conv_transpose2d_nhwc(x, w, bias=None, act_in=None, act_out=None,
                          out_dtype=jnp.bfloat16):
    """x: (N,H,W,Cin); w: torch layout (Cin,Cout,4,4)."""
    Cin, Cout, k, _ = w.shape
    N, H, W, _ = x.shape
    xp = jnp.pad(x, ((0, 0), (1, 1), (1, 1), (0, 0)))

    a_list, b_list = [], []
    for pa in (0, 1):
        for pb in (0, 1):
            taps, wts = [], []
            for ro, wr in _PHASE_TAPS[pa]:
                for co, wc in _PHASE_TAPS[pb]:
                    taps.append(xp[:, ro + 1:ro + 1 + H, co + 1:co + 1 + W, :])
                    wts.append(w[:, :, wr, wc])          # (Cin, Cout)
            a_list.append(jnp.stack(taps, axis=3).reshape(N * H * W, 4 * Cin))
            b_list.append(jnp.stack(wts, axis=0).reshape(4 * Cin, Cout))
    a_all = jnp.stack(a_list, axis=0)                    # (4, L, 4*Cin)
    b_all = jnp.stack(b_list, axis=0)                    # (4, 4*Cin, Cout)

    out = fused_matmul(a_all, b_all, bias=bias, act_in=act_in,
                       act_out=act_out, out_dtype=out_dtype)  # (4, L, Cout)
    out = out.reshape(2, 2, N, H, W, Cout)
    # Interleave phases: y[n, 2i+a, 2j+b, c] = out[a, b, n, i, j, c]
    return jnp.transpose(out, (2, 3, 0, 4, 1, 5)).reshape(N, 2 * H, 2 * W, Cout)


# ----------------------------------------------------------------------------
# U-Net construction (mirrors the recursive UNetBlock structure)
# ----------------------------------------------------------------------------
def init_unet_params(key, input_nc, output_nc, num_downs, ngf):
    def conv_w(k, cout, cin):
        return 0.05 * jax.random.normal(k, (cout, cin, 4, 4), jnp.float32)

    def convt_w(k, cin, cout):
        return 0.05 * jax.random.normal(k, (cin, cout, 4, 4), jnp.float32)

    # specs ordered innermost -> outermost
    specs = [dict(outer=ngf * 8, inner=ngf * 8, inp=ngf * 8, kind="innermost")]
    for _ in range(num_downs - 5):
        specs.append(dict(outer=ngf * 8, inner=ngf * 8, inp=ngf * 8, kind="middle"))
    specs.append(dict(outer=ngf * 4, inner=ngf * 8, inp=ngf * 4, kind="middle"))
    specs.append(dict(outer=ngf * 2, inner=ngf * 4, inp=ngf * 2, kind="middle"))
    specs.append(dict(outer=ngf, inner=ngf * 2, inp=ngf, kind="middle"))
    specs.append(dict(outer=output_nc, inner=ngf, inp=input_nc, kind="outermost"))

    params = []
    for s in specs:
        key, k1, k2, k3 = jax.random.split(key, 4)
        p = dict(kind=s["kind"])
        p["down_w"] = conv_w(k1, s["inner"], s["inp"])
        if s["kind"] == "outermost":
            p["up_w"] = convt_w(k2, s["inner"] * 2, s["outer"])
            p["up_bias"] = 0.05 * jax.random.normal(k3, (s["outer"],), jnp.float32)
        elif s["kind"] == "innermost":
            p["up_w"] = convt_w(k2, s["inner"], s["outer"])
            p["up_gamma"] = jnp.ones((s["outer"],), jnp.float32)
            p["up_beta"] = jnp.zeros((s["outer"],), jnp.float32)
        else:
            p["down_gamma"] = jnp.ones((s["inner"],), jnp.float32)
            p["down_beta"] = jnp.zeros((s["inner"],), jnp.float32)
            p["up_w"] = convt_w(k2, s["inner"] * 2, s["outer"])
            p["up_gamma"] = jnp.ones((s["outer"],), jnp.float32)
            p["up_beta"] = jnp.zeros((s["outer"],), jnp.float32)
        params.append(p)
    return params


def unet_forward(params, x_nchw):
    # NCHW -> NHWC once at the input; activations stay NHWC bf16 end-to-end.
    x = jnp.transpose(x_nchw, (0, 2, 3, 1)).astype(jnp.bfloat16)

    def run(idx, h):
        p = params[idx]
        kind = p["kind"]
        if kind == "outermost":
            d = conv2d_nhwc(h, p["down_w"])                       # [downconv]
            d = run(idx - 1, d)                                   # submodule
            return conv_transpose2d_nhwc(d, p["up_w"], bias=p["up_bias"],
                                         act_in=_relu, act_out=jnp.tanh,
                                         out_dtype=jnp.float32)   # [relu,upconv,tanh]
        elif kind == "innermost":
            d = conv2d_nhwc(h, p["down_w"], act_in=_leaky_relu)   # [lrelu,downconv]
            u = conv_transpose2d_nhwc(d, p["up_w"], act_in=_relu) # [relu,upconv]
            u = batchnorm2d_nhwc(u, p["up_gamma"], p["up_beta"])  # [bn]
            return jnp.concatenate([h, u], axis=-1)               # skip
        else:
            d = conv2d_nhwc(h, p["down_w"], act_in=_leaky_relu)   # [lrelu,downconv]
            d = batchnorm2d_nhwc(d, p["down_gamma"], p["down_beta"])
            d = run(idx - 1, d)                                   # submodule
            u = conv_transpose2d_nhwc(d, p["up_w"], act_in=_relu) # [relu,upconv]
            u = batchnorm2d_nhwc(u, p["up_gamma"], p["up_beta"])  # [bn]
            return jnp.concatenate([h, u], axis=-1)               # skip

    y = run(len(params) - 1, x)
    return jnp.transpose(y, (0, 3, 1, 2))                         # NHWC -> NCHW


# ----------------------------------------------------------------------------
# Plain-JAX references for focused correctness checks
# ----------------------------------------------------------------------------
def _ref_conv2d(x, w, act_in=None):
    xin = x if act_in is None else act_in(x)
    return jax.lax.conv_general_dilated(
        xin, jnp.transpose(w, (2, 3, 1, 0)), window_strides=(2, 2),
        padding=[(1, 1), (1, 1)], dimension_numbers=('NHWC', 'HWIO', 'NHWC'))


def _ref_convT(x, w, bias=None, act_in=None, act_out=None):
    xin = x if act_in is None else act_in(x)
    wf = jnp.transpose(w[:, :, ::-1, ::-1], (2, 3, 0, 1))   # flipped, HWIO
    y = jax.lax.conv_general_dilated(
        xin, wf, window_strides=(1, 1), padding=[(2, 2), (2, 2)],
        lhs_dilation=(2, 2), dimension_numbers=('NHWC', 'HWIO', 'NHWC'))
    if bias is not None:
        y = y + bias
    if act_out is not None:
        y = act_out(y)
    return y


def _ref_bn(x, gamma, beta, eps=1e-5):
    mean = x.mean(axis=(0, 1, 2), keepdims=True)
    var = ((x - mean) ** 2).mean(axis=(0, 1, 2), keepdims=True)
    return (x - mean) * jax.lax.rsqrt(var + eps) * gamma + beta


if __name__ == "__main__":
    # Unet(input_nc=3, output_nc=3, num_downs=5, ngf=8); 32x32 input so the
    # bottleneck reaches 1x1 exactly (spatial = 2**num_downs).
    input_nc, output_nc, num_downs, ngf = 3, 3, 5, 8
    N, H, W = 2, 32, 32

    key = jax.random.PRNGKey(0)
    kx, kp, kc = jax.random.split(key, 3)
    x = jax.random.normal(kx, (N, input_nc, H, W), jnp.float32)
    params = init_unet_params(kp, input_nc, output_nc, num_downs, ngf)

    # --- focused numerical checks of the Pallas building blocks ------------
    k1, k2, k3, k4, k5 = jax.random.split(kc, 5)
    xt = jax.random.normal(k1, (2, 8, 8, 8), jnp.float32).astype(jnp.bfloat16)
    xf = xt.astype(jnp.float32)

    wc = 0.05 * jax.random.normal(k2, (16, 8, 4, 4), jnp.float32)
    got = conv2d_nhwc(xt, wc, act_in=_leaky_relu).astype(jnp.float32)
    ref = _ref_conv2d(xf, wc, act_in=_leaky_relu)
    assert bool(jnp.allclose(got, ref, atol=5e-2, rtol=5e-2)), \
        float(jnp.max(jnp.abs(got - ref)))

    wt = 0.05 * jax.random.normal(k3, (8, 16, 4, 4), jnp.float32)
    bt = 0.05 * jax.random.normal(k4, (16,), jnp.float32)
    got = conv_transpose2d_nhwc(xt, wt, bias=bt, act_in=_relu).astype(jnp.float32)
    ref = _ref_convT(xf, wt, bias=bt, act_in=_relu)
    assert bool(jnp.allclose(got, ref, atol=5e-2, rtol=5e-2)), \
        float(jnp.max(jnp.abs(got - ref)))

    gamma = 1.0 + 0.1 * jax.random.normal(k5, (8,), jnp.float32)
    beta = 0.1 * jax.random.normal(k5, (8,), jnp.float32)
    got = batchnorm2d_nhwc(xt, gamma, beta).astype(jnp.float32)
    ref = _ref_bn(xf, gamma, beta)
    assert bool(jnp.allclose(got, ref, atol=3e-2, rtol=3e-2)), \
        float(jnp.max(jnp.abs(got - ref)))

    # --- full forward pass ---------------------------------------------------
    fwd = jax.jit(functools.partial(unet_forward, params))
    y = jax.block_until_ready(fwd(x))
    assert y.shape == (N, output_nc, H, W), y.shape
    assert bool(jnp.all(jnp.isfinite(y)))
    print("KERNEL_OK")
</pallas_src>

<mosaic_0001>
module attributes {stable_mosaic.version = 11 : i64} {
  func.func @kernel(%arg0: i32, %arg1: i32, %arg2: i32, %arg3: memref<1x16x128xbf16, #tpu.memory_space<vmem>>, %arg4: memref<1x128x128xbf16, #tpu.memory_space<vmem>>, %arg5: memref<1x16x128xbf16, #tpu.memory_space<vmem>>) attributes {dimension_semantics = [#tpu.dimension_semantics<parallel>, #tpu.dimension_semantics<parallel>, #tpu.dimension_semantics<parallel>], iteration_bounds = array<i64: 1, 2, 1>, scalar_prefetch = 0 : i64, scratch_operands = 0 : i64, tpu.core_type = #tpu.core_type<tc>, window_params = [{transform_indices = @transform_0, window_bounds = array<i64: 1, 16, 128>}, {transform_indices = @transform_1, window_bounds = array<i64: 1, 128, 128>}, {transform_indices = @transform_2, window_bounds = array<i64: 1, 16, 128>}]} {
    %c0 = arith.constant 0 : index
    %c0_0 = arith.constant 0 : index
    %c0_1 = arith.constant 0 : index
    %0 = vector.load %arg3[%c0, %c0_0, %c0_1] : memref<1x16x128xbf16, #tpu.memory_space<vmem>>, vector<1x16x128xbf16>
    %1 = vector.shape_cast %0 : vector<1x16x128xbf16> to vector<16x128xbf16>
    %cst = arith.constant 0.000000e+00 : bf16
    %2 = vector.broadcast %cst : bf16 to vector<16x128xbf16>
    %3 = arith.cmpf oge, %1, %2 : vector<16x128xbf16>
    %cst_2 = arith.constant 2.001950e-01 : bf16
    %4 = vector.broadcast %cst_2 : bf16 to vector<16x128xbf16>
    %5 = arith.mulf %4, %1 : vector<16x128xbf16>
    %6 = arith.select %3, %1, %5 : vector<16x128xi1>, vector<16x128xbf16>
    %c0_3 = arith.constant 0 : index
    %c0_4 = arith.constant 0 : index
    %c0_5 = arith.constant 0 : index
    %7 = vector.load %arg4[%c0_3, %c0_4, %c0_5] : memref<1x128x128xbf16, #tpu.memory_space<vmem>>, vector<1x128x128xbf16>
    %8 = vector.shape_cast %7 : vector<1x128x128xbf16> to vector<128x128xbf16>
    %cst_6 = arith.constant dense<0.000000e+00> : vector<16x128xf32>
    %9 = tpu.matmul %6, %8, %cst_6 {dimension_numbers = #tpu.dot_dimension_numbers<[1], [0], [0], [1], [0, 0, 1, 1], [], []>} : vector<16x128xbf16>, vector<128x128xbf16>, vector<16x128xf32> -> vector<16x128xf32>
    %10 = arith.truncf %9 : vector<16x128xf32> to vector<16x128xbf16>
    %c0_7 = arith.constant 0 : index
    %c0_8 = arith.constant 0 : index
    %c0_9 = arith.constant 0 : index
    %11 = vector.load %arg5[%c0_7, %c0_8, %c0_9] : memref<1x16x128xbf16, #tpu.memory_space<vmem>>, vector<1x16x128xbf16>
    %12 = vector.shape_cast %11 : vector<1x16x128xbf16> to vector<16x128xbf16>
    %13 = vector.shape_cast %10 : vector<16x128xbf16> to vector<1x16x128xbf16>
    tpu.vector_store %arg5[%c0_7, %c0_8, %c0_9], %13 {strides = array<i32>} : memref<1x16x128xbf16, #tpu.memory_space<vmem>>, vector<1x16x128xbf16>,
    return
  }
  func.func @transform_0(%arg0: i32, %arg1: i32, %arg2: i32) -> (i32, i32, i32) {
    %c0_i32 = arith.constant 0 : i32
    %c0_i32_0 = arith.constant 0 : i32
    return %arg0, %arg1, %c0_i32 : i32, i32, i32
  }
  func.func @transform_1(%arg0: i32, %arg1: i32, %arg2: i32) -> (i32, i32, i32) {
    %c0_i32 = arith.constant 0 : i32
    %c0_i32_0 = arith.constant 0 : i32
    return %arg0, %c0_i32, %arg2 : i32, i32, i32
  }
  func.func @transform_2(%arg0: i32, %arg1: i32, %arg2: i32) -> (i32, i32, i32) {
    %c0_i32 = arith.constant 0 : i32
    return %arg0, %arg1, %arg2 : i32, i32, i32
  }
}

</mosaic_0001>

<bundles_post_ra>
// kernel: tpu_custom_call.1
= control target key start
LH: loop header
LB: loop body
LE: loop exit
PB: predicated region body
PF: predicated region fallthrough
CT: control target
= control target key end

     0   :  { %7 = vsyncpa [#allocation3], 0  ;;  %s915_s0 = inlined_call_operand.hbm [shape: bf16[1,32,128], index: 0, kind: input, shape index: {}]   ;;  %s916_s1 = inlined_call_operand.hbm [shape: bf16[1,128,128], index: 1, kind: input, shape index: {}]   ;;  %s917_s2 = inlined_call_operand.hbm [shape: bf16[1,32,128], index: 2, kind: output, shape index: {}]  }
   0x1   :  { %9 = vsyncpa [#allocation3 + $0x1], 0 }
   0x2   :  { %10 = vsyncpa [#allocation6], 0 }
   0x3   :  { %11 = vsyncpa [#allocation4], 0 }
   0x4   :  { %13 = vsyncpa [#allocation4 + $0x1], 0  ;;  %s756_s9 = smov 0   ;;  %s758_s10 = smov 0  }
   0x5   :  { %s760_s11 = smov 0   ;;  %s762_s12 = smov 0  }
   0x6   :  { %s764_s13 = smov 0   ;;  %s766_s14 = smov 0  }
   0x7 LB: > { %s447_s15 = sadd.s32 4294967295, %s734_s14   ;;  %s448_s16 = sadd.s32 4294967294, %s734_s14   ;;  %s734_s14 = sphi %s766_s14, %s19_s14   ;;  %s730_s13 = sphi %s764_s13, %s929_s13   ;;  %s726_s12 = sphi %s762_s12, %s928_s12   ;;  %s722_s11 = sphi %s760_s11, %s927_s11   ;;  %s718_s10 = sphi %s758_s10, %s926_s10   ;;  %s714_s9 = sphi %s756_s9, %s925_s9  }
   0x8   : > { %p60_p0 = scmp.ne.s32.totalorder %s718_s10, %s714_s9  ;;  %p790_p1 = scmp.eq.s32.totalorder %s447_s15, 0 }
   0x9   : > { %p794_p2 = scmp.eq.s32.totalorder %s447_s15, 1  ;;  %p122_p3 = scmp.eq.s32.totalorder %s448_s16, 1 }
   0xa   : > { %p800_p4 = por %p790_p1, %p60_p0  ;;  %p449_p5 = scmp.ge.s32.totalorder %s734_s14, 1 }
   0xb   : > { %p805_p6 = por %p122_p3, %p60_p0  ;;  %p129_p7 = scmp.lt.s32.totalorder %s734_s14, 3 }
   0xc   : > { %s144_s23 = sshll.u32 %s916_s1, 4  ;;  %s736_s25 = smov [#allocation5]   ;;  %s145_s23 = int_to_ptr.hbm [resolvable:$true] %s144_s23 }
   0xd   : > { %p813_p8 = pnand %p449_p5, %p129_p7  ;;  %s146_s26 = sshll.u32 %s736_s25, 4  ;;  %s147_s26 = int_to_ptr.vmem [resolvable:$true] %s146_s26 }
   0xe   : > { %p451_p11 = scmp.ge.s32.totalorder %s734_s14, 2  ;;  %s737_s27 = smov 64  }
   0xf   : > { %p519_p9 = pneg %p813_p8  ;;  %s738_s28 = smov 4  }
  0x10   : > { %s34_s29 = sadd.s32 1, %s730_s13  ;;  %s47_s30 = sadd.s32 1, %s722_s11 }
  0x11   : > { %p520_p10 = pnand %p519_p9, %p790_p1  ;;  %p36_p12 = scmp.ge.s32.totalorder %s34_s29, 2 }
  0x12   : > { %p54_p13 = scmp.ne.s32.totalorder %s722_s11, %s718_s10  ;;  %p55_p0 = scmp.eq.s32.totalorder %s734_s14, 0 }
  0x13   : > { %522 = dma.hbm_to_vmem [thread:$0]  (!%p520_p10), %s145_s23, 1024, %s147_s26, [#allocation6], %s737_s27, %s737_s27, %s738_s28  }
  0x14   : > { %s931_s29 = smov (%p36_p12, %s34_s29), 0  ;;  %p832_p3 = por %p55_p0, %p54_p13 }
  0x15   : > { %p838_p5 = por %p794_p2, %p54_p13  ;;  %s43_s5 = ssub.s32 %s730_s13, %s931_s29 }
  0x16   : > { %p532_p7 = scmp.lt.s32.totalorder %s734_s14, 2  ;;  %p45_p9 = scmp.eq.s32.totalorder %s43_s5, 0 }
  0x17   : > { %s160_s6 = sand.u32 1, %s722_s11   ;;  %s496_s15 = sshll.u32 %s730_s13, 3 }
  0x18   : > { %s452_s7 = sshll.u32 %s160_s6, 3  ;;  %s171_s22 = scalar_lea.hbm %s915_s0, %s496_s15 }
  0x19   : > { %s847_s8 = scalar_select %p45_p9, %s722_s11, %s47_s30  }
  0x1a   : > { %s164_s23 = scalar_lea.vmem [#allocation2], %s452_s7  ;;  %s172_s18 = sshll.u32 %s171_s22, 4  ;;  %s173_s18 = int_to_ptr.hbm [resolvable:$true] %s172_s18 }
  0x1b   : > { %s174_s25 = sshll.u32 %s164_s23, 4  ;;  %p524_p2 = pnand %p532_p7, %p832_p3  ;;  %s175_s25 = int_to_ptr.vmem [resolvable:$true] %s174_s25 }
  0x1c   : > { %s161_s26 = scalar_lea.sflag [#allocation3], %s160_s6  ;;  %186 = sbr.rel (%p813_p8) target bundleno = 208 (0xd0), region = 28 }
  0x1d   : > { %526 = dma.hbm_to_vmem [thread:$0]  (!%p524_p2), %s173_s18, 128, %s175_s25, %s161_s26, %s737_s27, %s737_s27, %s738_s28  }
  0x1e   : > { %s861_s30 = sand.u32 (!%p813_p8), 1, %s718_s10  }
  0x1f   : > { %s456_s5 = sshll.u32 (!%p813_p8), %s861_s30, 3  ;;  %s189_s7 = scalar_lea.sflag (!%p813_p8), [#allocation3], %s861_s30 }
  0x20   : > { %s192_s3 = scalar_lea.vmem (!%p813_p8), [#allocation2], %s456_s5 }
  0x21   : > { %701 = dma.done.wait (%p800_p4), %s189_s7, 128  }
  0x22   : > { %703 = vsyncadd (%p800_p4), %s189_s7, 4294967168 }
  0x23   : > { %705 = dma.done.wait (%p790_p1), [#allocation6], 1024  }
  0x24   : > { %707 = vsyncadd (%p790_p1), [#allocation6], 4294966272  ;;  %v504_v0 = vld [vmem:[#allocation5 + $0x38] sm:$0xff]  ;;  %v503_v1 = vld [vmem:[#allocation5 + $0x30] sm:$0xff]  ;;  %s505_s17 = sshll.u32 %s726_s12, 3  ;;  %s218_s28 = scalar_lea.vmem [#allocation7], %s456_s5 }
  0x25   : > { %305 = vmatpush.bf16.msra.mxu0 %v504_v0  ;;  %v502_v2 = vld [vmem:[#allocation5 + $0x28] sm:$0xff]  ;;  %v221_v3 = vld [vmem:[%s192_s3] sm:$0xf]  ;;  %v222_v4 = vld [vmem:[%s192_s3 + $0x4] sm:$0xf]  ;;  %s338_s27 = scalar_lea.hbm %s917_s2, %s505_s17  ;;  %s339_s6 = sshll.u32 %s218_s28, 4  ;;  %s340_s6 = int_to_ptr.vmem [resolvable:$true] %s339_s6 }
  0x26   : > { %v501_v5 = vld [vmem:[#allocation5 + $0x20] sm:$0xff]  ;;  %v223_v6 = vunpack.c.l.bf16 %v221_v3  ;;  %v224_v7 = vunpack.c.l.bf16 %v222_v4  ;;  %v500_v8 = vld [vmem:[#allocation5 + $0x18] sm:$0xff]  ;;  %v499_v11 = vld [vmem:[#allocation5 + $0x10] sm:$0xff]  ;;  %s341_s15 = sshll.u32 %s338_s27, 4  ;;  %s324_s16 = scalar_lea.sflag [#allocation4], %s861_s30  ;;  %s342_s15 = int_to_ptr.hbm [resolvable:$true] %s341_s15 }
  0x27   : > { %v498_v14 = vld [vmem:[#allocation5 + $0x8] sm:$0xff]  ;;  %v497_v19 = vld [vmem:[#allocation5] sm:$0xff]  ;;  %s662_s21 = sshra.s32 %s342_s15, 4  ;;  %s668_s25 = scalar_lea.hbm %s917_s2, 16  ;;  %s663_s21 = int_to_ptr.hbm [resolvable:$true] %s662_s21 }
  0x28   : > { %v227_v9 = vmul.f32 0.20019531, %v223_v6  ;;  %v228_v10 = vmul.f32 0.20019531, %v224_v7  ;;  %vm225_vm0 = vcmp.ge.f32.partialorder %v223_v6, 0.0  ;;  %vm226_vm1 = vcmp.ge.f32.partialorder %v224_v7, 0.0  ;;  %s664_s22 = scalar_lea.hbm %s663_s21, 8  ;;  %p669_p10 = scmp.lt.s32.totalorder %s663_s21, %s917_s2 }
  0x29   : > { %306 = vmatpush.bf16.msra.mxu0 %v503_v1  ;;  %vm231_vm2 = vmpackc.low %vm225_vm0, %vm225_vm0  ;;  %p665_p1 = scmp.ne.s32.totalorder %s663_s21, %s664_s22  ;;  %p670_p12 = scmp.lt.s32.totalorder %s668_s25, %s664_s22 }
  0x2a   : > { %v229_v12 = vpack.c.bf16 %v227_v9, %v227_v9  ;;  %v230_v13 = vpack.c.bf16 %v228_v10, %v228_v10  ;;  %vm232_vm3 = vmpackc.low %vm226_vm1, %vm226_vm1 }
  0x2b   : > { %p666_p4 = pnand %p665_p1, %p838_p5  ;;  %p671_p13 = por %p670_p12, %p669_p10 }
  0x2c   : > { %v233_v15 = vsel %vm231_vm2, %v221_v3, %v229_v12  ;;  %v234_v16 = vsel %vm232_vm3, %v222_v4, %v230_v13 }
  0x2d   : > { %307 = vmatpush.bf16.msra.mxu0 %v502_v2  ;;  %v253_v17 = vunpack.c.l.b16 %v233_v15  ;;  %v254_v18 = vunpack.c.l.b16 %v234_v16  ;;  %p667_p8 = pneg %p666_p4 }
  0x2f   : > { %v255_v20 = vpack.c.b16 %v254_v18, %v253_v17  ;;  %p672_p0 = pnand %p671_p13, %p667_p8 }
  0x31   : > { %308 = vmatpush.bf16.msra.mxu0 %v501_v5 }
  0x35   : > { %309 = vmatpush.bf16.msra.mxu0 %v500_v8 }
  0x39   : > { %310 = vmatpush.bf16.msra.mxu0 %v499_v11 }
  0x3d   : > { %311 = vmatpush.bf16.msra.mxu0 %v498_v14 }
  0x41   : > { %312 = vmatpush.bf16.msra.mxu0 %v497_v19 }
  0x44   : > { %313 = vmatmul.bf16.vlgmr.msra.gmra.mxu0 %v255_v20 }
  0xc1   : > { %v314_v21 = vpop.f32.mrf.mxu0 }
  0xc9   : > { %v316_v22 = vpop.f32.mrf.mxu0 }
  0xca   : > { %v509_v23 = vpack.c.bf16 %v316_v22, %v314_v21 }
  0xcc   : > { %510 = vst [vmem:[%s218_s28] sm:$0xff] %v509_v23  }
  0xcd   : > { %675 = shalt.err (!%p672_p0)
}
  0xce   : > { %s739_s30 = smov 64   ;;  %s740_s5 = smov 4  }
  0xcf   : > { %517 = dma.vmem_to_hbm [thread:$0]  (%p838_p5), %s340_s6, 128, %s342_s15, %s324_s16, %s739_s30, %s739_s30, %s740_s5  }
  0xd0 PF: > { %s356_s7 = sand.u32 1, %s714_s9   ;;  %p528_p3 = pnand %p451_p11, %p805_p6 }
  0xd1   : > { %s357_s3 = scalar_lea.sflag [#allocation4], %s356_s7 }
  0xd2   : > { %p529_p7 = pneg %p528_p3 }
  0xd4   : > { %709 = dma.done.wait (%p529_p7), %s357_s3, 128  }
  0xd5   : > { %711 = vsyncadd (%p529_p7), %s357_s3, 4294967168  ;;  %s19_s14 = sadd.s32 1, %s734_s14   ;;  %s925_s9 = smov %s718_s10 }
  0xd6   : > { %p16_p9 = scmp.ge.s32.totalorder %s19_s14, 4   ;;  %s926_s10 = smov %s722_s11 }
  0xd7   : > { %s927_s11 = smov %s847_s8  ;;  %s928_s12 = smov %s730_s13 }
  0xd8   : > { %s929_s13 = smov %s931_s29  ;;  %18 = sbr.rel (!%p16_p9) target bundleno = 7 (0x7), region = 78 }
  0xdd   :  { %363 = vsyncpa [#allocation3], 1 }
  0xde   :  { %365 = vsyncpa [#allocation3 + $0x1], 1 }
  0xdf   :  { %366 = vsyncpa [#allocation6], 1 }
  0xe0   :  { %367 = vsyncpa [#allocation4], 1 }
  0xe1   :  { %369 = vsyncpa [#allocation4 + $0x1], 1 }

</bundles_post_ra>
